<compile_context>
chip_gen: v7x
topology: tpu7x:2x2x1
jax: 0.10.0
libtpu: 0.0.40
codegen_flags: <defaults>
</compile_context>

<pallas_src>
import jax
import jax.numpy as jnp
from jax.experimental import pallas as pl
from jax.experimental.pallas import tpu as pltpu


def _round_up(v, m):
    return (v + m - 1) // m * m


def _pad2(a, r, c):
    pr, pc = r - a.shape[0], c - a.shape[1]
    if pr == 0 and pc == 0:
        return a
    return jnp.pad(a, ((0, pr), (0, pc)))


def _pad3(a, b, r, c):
    pb, pr, pc = b - a.shape[0], r - a.shape[1], c - a.shape[2]
    if pb == 0 and pr == 0 and pc == 0:
        return a
    return jnp.pad(a, ((0, pb), (0, pr), (0, pc)))


def _pick_batch_block(B, Np, Fp, cbytes, vmem_cap):
    """Largest batch-slab Bb whose VMEM footprint fits (with headroom)."""
    headroom = 2 * 2 ** 20
    best = 1
    for bb in range(1, B + 1):
        if bb * Np > 1024:  # MXU M already saturated past this; stop growing
            break
        resid = (Np * Np + Fp * Fp) * cbytes + bb * Fp * 4   # adj + W^T + tiled bias (single-buffered)
        x_slab = 2 * bb * Np * Fp * cbytes                   # input slab, double-buffered
        o_slab = 2 * Np * bb * Fp * 4                        # f32 output slab, double-buffered
        scratch = Np * bb * Fp * cbytes                      # xw staging
        live = bb * Np * Fp * 4                              # fc1 f32 result (vregs / spill)
        if resid + x_slab + o_slab + scratch + live + headroom <= vmem_cap:
            best = bb
    return best


def _gnn_kernel(adj_ref, x_ref, wt_ref, b_ref, o_ref, xw_ref):
    """One grid step: a slab of Bb batch elements.

    adj_ref : (Np, Np)       normalized adjacency (compute dtype, resident)
    x_ref   : (Bb, Np, Fp)   node features (compute dtype)
    wt_ref  : (Fp, Fp)       fc1 weight, pre-transposed to (in, out) (compute dtype)
    b_ref   : (1, Bb*Fp)     fc1 bias tiled Bb times along lanes (f32, resident)
    o_ref   : (Np, Bb*Fp)    output slab, node-major (f32)
    xw_ref  : (Np, Bb*Fp)    VMEM scratch staging the fc1 result (compute dtype)
    """
    bb, npad, fp = x_ref.shape

    # fc1 as ONE MXU matmul over the whole slab: (Bb*Np, Fp) @ (Fp, Fp), f32 acc.
    # A @ (X @ W^T) == (A @ X) @ W^T, so fc1 can run first.
    xw = jnp.dot(x_ref[...].reshape(bb * npad, fp), wt_ref[...],
                 preferred_element_type=jnp.float32)

    # Stage the fc1 result into (Np, Bb*Fp): batch element bi occupies lane
    # columns [bi*Fp, (bi+1)*Fp).  Source rows [bi*Np, (bi+1)*Np) are sublane
    # aligned (Np % 8 == 0) and destination lanes 128-aligned, so these are
    # plain tile-aligned stores (explicit, single spill of the f32 intermediate).
    for bi in range(bb):
        xw_ref[:, bi * fp:(bi + 1) * fp] = (
            xw[bi * npad:(bi + 1) * npad, :].astype(xw_ref.dtype))

    # Graph aggregation as ONE matmul: (Np, Np) @ (Np, Bb*Fp) for the whole slab.
    y = jnp.dot(adj_ref[...], xw_ref[...], preferred_element_type=jnp.float32)

    # Bias + ReLU epilogue once per slab: single broadcast, lane-dense store.
    o_ref[...] = jnp.maximum(y + b_ref[...], 0.0).astype(o_ref.dtype)


def gnn_layer(x, adj, weight, bias, *, compute_dtype=jnp.bfloat16, batch_block=None):
    """
    x:      (B, N, F) float32
    adj:    (N, N)    float32
    weight: (F, F)    float32  -- PyTorch nn.Linear weight (out_features, in_features)
    bias:   (F,)      float32
    compute_dtype: matmul-operand dtype (bf16 default = MXU-native on all gens;
                   pass jnp.float32 for strict accuracy).  Accumulation is f32.
    returns (B, N, F) float32
    """
    B, N, F = x.shape
    cdt = jnp.dtype(compute_dtype)
    cbytes = cdt.itemsize

    # ---- grid-invariant work hoisted out of the kernel: D^-1/2 A D^-1/2 ----
    deg = jnp.sum(adj, axis=1)
    safe_deg = jnp.where(deg > 0, deg, 1.0)
    d_inv_sqrt = jnp.where(deg > 0, jax.lax.rsqrt(safe_deg), 0.0)  # zero-degree guard
    adj_norm = d_inv_sqrt[:, None] * adj * d_inv_sqrt[None, :]

    # ---- TPU-friendly padding: lanes x128, sublanes x8 (skipped when aligned) ----
    Fp = _round_up(F, 128)
    Np = _round_up(N, 8)

    # ---- generation-aware VMEM capacity ----
    try:
        vmem_cap = int(pltpu.get_tpu_info().vmem_capacity_bytes)
    except Exception:
        vmem_cap = 64 * 2 ** 20  # conservative (v7x per-TensorCore)

    # ---- batch elements per grid step (VMEM- and MXU-aware) ----
    if batch_block is None:
        Bb = _pick_batch_block(B, Np, Fp, cbytes, vmem_cap)
        # Keep >= 2 grid steps when possible so both v7x TensorCores get work.
        if B >= 2 and -(-B // Bb) < 2:
            Bb = -(-B // 2)
    else:
        Bb = max(1, min(int(batch_block), B))
    Bp = -(-B // Bb) * Bb          # pad B instead of requiring divisibility
    grid = (Bp // Bb,)

    x_p = _pad3(x, Bp, Np, Fp).astype(cdt)
    adj_p = _pad2(adj_norm, Np, Np).astype(cdt)
    wt_p = _pad2(weight.T, Fp, Fp).astype(cdt)                       # (in, out)
    b_p = _pad2(bias.reshape(1, F), 1, Fp).astype(jnp.float32)
    b_t = jnp.tile(b_p, (1, Bb))                                     # (1, Bb*Fp)

    # ---- explicit VMEM budget (always set; v5e default scoped limit is 16 MiB) ----
    resid = 2 * ((Np * Np + Fp * Fp) * cbytes + Bb * Fp * 4)         # worst case (fallback double-buffered)
    slabs = 2 * Bb * Np * Fp * cbytes + 2 * Np * Bb * Fp * 4
    scratch = Np * Bb * Fp * cbytes + Bb * Np * Fp * 4               # xw staging + f32 fc1 result
    est = resid + slabs + scratch
    vmem_limit = int(min(0.9 * vmem_cap, max(1.5 * est, 32 * 2 ** 20)))

    def build(single_buffer_residents):
        rkw = dict(pipeline_mode=pl.Buffered(1)) if single_buffer_residents else {}
        return pl.pallas_call(
            _gnn_kernel,
            out_shape=jax.ShapeDtypeStruct((Np, Bp * Fp), jnp.float32),
            grid_spec=pltpu.PrefetchScalarGridSpec(
                num_scalar_prefetch=0,
                grid=grid,
                in_specs=[
                    pl.BlockSpec((Np, Np), lambda b: (0, 0), **rkw),        # adj_norm (resident)
                    pl.BlockSpec((Bb, Np, Fp), lambda b: (b, 0, 0)),        # x slab (pipelined)
                    pl.BlockSpec((Fp, Fp), lambda b: (0, 0), **rkw),        # W^T (resident)
                    pl.BlockSpec((1, Bb * Fp), lambda b: (0, 0), **rkw),    # tiled bias (resident)
                ],
                out_specs=pl.BlockSpec((Np, Bb * Fp), lambda b: (0, b)),    # node-major output slab
                scratch_shapes=[pltpu.VMEM((Np, Bb * Fp), cdt)],            # xw staging
            ),
            compiler_params=pltpu.CompilerParams(
                dimension_semantics=("parallel",),   # batch slabs are independent
                vmem_limit_bytes=vmem_limit,
            ),
        )

    try:
        out2d = build(True)(adj_p, x_p, wt_p, b_t)
    except Exception:
        # pl.Buffered(1) not accepted by this build -> default (double) buffering.
        out2d = build(False)(adj_p, x_p, wt_p, b_t)

    # (Np, Bp*Fp) -> (Bp, Np, Fp) -> (B, N, F)
    out = out2d.reshape(Np, Bp, Fp).transpose(1, 0, 2)
    if (Bp, Np, Fp) != (B, N, F):
        out = out[:B, :N, :F]
    return out


def gnn_layer_ref(x, adj, weight, bias):
    """Pure-JAX reference mirroring the PyTorch forward."""
    deg = jnp.sum(adj, axis=1)
    d_inv_sqrt = jnp.where(deg > 0, 1.0 / jnp.sqrt(jnp.where(deg > 0, deg, 1.0)), 0.0)
    adj_norm = d_inv_sqrt[:, None] * adj * d_inv_sqrt[None, :]
    h = jnp.einsum("ij,bjf->bif", adj_norm, x)
    y = jnp.einsum("bif,of->bio", h, weight) + bias
    return jnp.maximum(y, 0.0)


if __name__ == "__main__":
    B, N, F = 2, 16, 32  # batch, num_nodes, node_feature (input_size = F)

    key = jax.random.PRNGKey(0)
    kx, ka, kw, kb = jax.random.split(key, 4)

    x = jax.random.normal(kx, (B, N, F), dtype=jnp.float32)

    # Symmetric 0/1 adjacency with self-loops (guarantees positive degrees).
    a = (jax.random.uniform(ka, (N, N)) > 0.5).astype(jnp.float32)
    adj = jnp.clip(a + a.T, 0.0, 1.0) + jnp.eye(N, dtype=jnp.float32)
    adj = jnp.clip(adj, 0.0, 1.0)

    # Deterministic fc1 parameters (nn.Linear(input_size, input_size)).
    bound = 1.0 / jnp.sqrt(F)
    weight = jax.random.uniform(kw, (F, F), minval=-bound, maxval=bound, dtype=jnp.float32)
    bias = jax.random.uniform(kb, (F,), minval=-bound, maxval=bound, dtype=jnp.float32)

    ref = gnn_layer_ref(x, adj, weight, bias)

    # f32 operand path (tight tolerance).
    out_f32 = jax.block_until_ready(
        gnn_layer(x, adj, weight, bias, compute_dtype=jnp.float32))
    assert out_f32.shape == (B, N, F)
    assert jnp.allclose(out_f32, ref, atol=1e-4, rtol=1e-4), "f32 mismatch vs reference"

    # Default bf16 operand path (MXU-native on v5e/v6e/v7x); f32 accumulation,
    # looser tolerance (fc1 accumulator is rounded to bf16 before aggregation).
    out_bf16 = jax.block_until_ready(gnn_layer(x, adj, weight, bias))
    assert out_bf16.shape == (B, N, F)
    assert jnp.allclose(out_bf16, ref, atol=5e-2, rtol=5e-2), "bf16 mismatch vs reference"

    print("KERNEL_OK")
</pallas_src>

<mosaic_0001>
module attributes {stable_mosaic.version = 11 : i64} {
  func.func @_gnn_kernel(%arg0: i32, %arg1: memref<16x16xf32, #tpu.memory_space<vmem>>, %arg2: memref<1x16x128xf32, #tpu.memory_space<vmem>>, %arg3: memref<128x128xf32, #tpu.memory_space<vmem>>, %arg4: memref<1x128xf32, #tpu.memory_space<vmem>>, %arg5: memref<16x128xf32, #tpu.memory_space<vmem>>, %arg6: memref<16x128xf32, #tpu.memory_space<vmem>>) attributes {dimension_semantics = [#tpu.dimension_semantics<parallel>], iteration_bounds = array<i64: 2>, scalar_prefetch = 0 : i64, scratch_operands = 1 : i64, tpu.core_type = #tpu.core_type<tc>, window_params = [{pipeline_mode = #tpu.pipeline_mode<synchronous>, transform_indices = @transform_0, window_bounds = array<i64: 16, 16>}, {transform_indices = @transform_1, window_bounds = array<i64: 1, 16, 128>}, {pipeline_mode = #tpu.pipeline_mode<synchronous>, transform_indices = @transform_2, window_bounds = array<i64: 128, 128>}, {pipeline_mode = #tpu.pipeline_mode<synchronous>, transform_indices = @transform_3, window_bounds = array<i64: 1, 128>}, {transform_indices = @transform_4, window_bounds = array<i64: 16, 128>}]} {
    %c0 = arith.constant 0 : index
    %c0_0 = arith.constant 0 : index
    %c0_1 = arith.constant 0 : index
    %0 = vector.load %arg2[%c0, %c0_0, %c0_1] : memref<1x16x128xf32, #tpu.memory_space<vmem>>, vector<1x16x128xf32>
    %1 = vector.shape_cast %0 : vector<1x16x128xf32> to vector<16x128xf32>
    %c0_2 = arith.constant 0 : index
    %c0_3 = arith.constant 0 : index
    %2 = vector.load %arg3[%c0_2, %c0_3] : memref<128x128xf32, #tpu.memory_space<vmem>>, vector<128x128xf32>
    %cst = arith.constant dense<0.000000e+00> : vector<16x128xf32>
    %3 = tpu.matmul %1, %2, %cst {dimension_numbers = #tpu.dot_dimension_numbers<[1], [0], [0], [1], [0, 0, 1, 1], [], []>} : vector<16x128xf32>, vector<128x128xf32>, vector<16x128xf32> -> vector<16x128xf32>
    %c0_4 = arith.constant 0 : index
    %c0_5 = arith.constant 0 : index
    %4 = vector.load %arg6[%c0_4, %c0_5] : memref<16x128xf32, #tpu.memory_space<vmem>>, vector<16x128xf32>
    tpu.vector_store %arg6[%c0_4, %c0_5], %3 {strides = array<i32>} : memref<16x128xf32, #tpu.memory_space<vmem>>, vector<16x128xf32>,
    %c0_6 = arith.constant 0 : index
    %c0_7 = arith.constant 0 : index
    %5 = vector.load %arg1[%c0_6, %c0_7] : memref<16x16xf32, #tpu.memory_space<vmem>>, vector<16x16xf32>
    %c0_8 = arith.constant 0 : index
    %c0_9 = arith.constant 0 : index
    %6 = vector.load %arg6[%c0_8, %c0_9] : memref<16x128xf32, #tpu.memory_space<vmem>>, vector<16x128xf32>
    %cst_10 = arith.constant dense<0.000000e+00> : vector<16x128xf32>
    %7 = tpu.matmul %5, %6, %cst_10 {dimension_numbers = #tpu.dot_dimension_numbers<[1], [0], [0], [1], [0, 0, 1, 1], [], []>} : vector<16x16xf32>, vector<16x128xf32>, vector<16x128xf32> -> vector<16x128xf32>
    %c0_11 = arith.constant 0 : index
    %c0_12 = arith.constant 0 : index
    %8 = vector.load %arg4[%c0_11, %c0_12] : memref<1x128xf32, #tpu.memory_space<vmem>>, vector<1x128xf32>
    %9 = vector.broadcast %8 : vector<1x128xf32> to vector<16x128xf32>
    %10 = arith.addf %7, %9 : vector<16x128xf32>
    %cst_13 = arith.constant 0.000000e+00 : f32
    %11 = vector.broadcast %cst_13 : f32 to vector<16x128xf32>
    %12 = arith.maximumf %10, %11 : vector<16x128xf32>
    %c0_14 = arith.constant 0 : index
    %c0_15 = arith.constant 0 : index
    %13 = vector.load %arg5[%c0_14, %c0_15] : memref<16x128xf32, #tpu.memory_space<vmem>>, vector<16x128xf32>
    tpu.vector_store %arg5[%c0_14, %c0_15], %12 {strides = array<i32>} : memref<16x128xf32, #tpu.memory_space<vmem>>, vector<16x128xf32>,
    return
  }
  func.func @transform_0(%arg0: i32) -> (i32, i32) {
    %c0_i32 = arith.constant 0 : i32
    %c0_i32_0 = arith.constant 0 : i32
    %c0_i32_1 = arith.constant 0 : i32
    return %c0_i32, %c0_i32_0 : i32, i32
  }
  func.func @transform_1(%arg0: i32) -> (i32, i32, i32) {
    %c0_i32 = arith.constant 0 : i32
    %c0_i32_0 = arith.constant 0 : i32
    %c0_i32_1 = arith.constant 0 : i32
    return %arg0, %c0_i32, %c0_i32_0 : i32, i32, i32
  }
  func.func @transform_2(%arg0: i32) -> (i32, i32) {
    %c0_i32 = arith.constant 0 : i32
    %c0_i32_0 = arith.constant 0 : i32
    %c0_i32_1 = arith.constant 0 : i32
    return %c0_i32, %c0_i32_0 : i32, i32
  }
  func.func @transform_3(%arg0: i32) -> (i32, i32) {
    %c0_i32 = arith.constant 0 : i32
    %c0_i32_0 = arith.constant 0 : i32
    %c0_i32_1 = arith.constant 0 : i32
    return %c0_i32, %c0_i32_0 : i32, i32
  }
  func.func @transform_4(%arg0: i32) -> (i32, i32) {
    %c0_i32 = arith.constant 0 : i32
    %c0_i32_0 = arith.constant 0 : i32
    return %c0_i32, %arg0 : i32, i32
  }
}

module attributes {stable_mosaic.version = 11 : i64} {
  func.func @_gnn_kernel(%arg0: i32, %arg1: memref<16x16xf32, #tpu.memory_space<vmem>>, %arg2: memref<1x16x128xf32, #tpu.memory_space<vmem>>, %arg3: memref<128x128xf32, #tpu.memory_space<vmem>>, %arg4: memref<1x128xf32, #tpu.memory_space<vmem>>, %arg5: memref<16x128xf32, #tpu.memory_space<vmem>>, %arg6: memref<16x128xf32, #tpu.memory_space<vmem>>) attributes {dimension_semantics = [#tpu.dimension_semantics<parallel>], iteration_bounds = array<i64: 2>, scalar_prefetch = 0 : i64, scratch_operands = 1 : i64, tpu.core_type = #tpu.core_type<tc>, window_params = [{pipeline_mode = #tpu.pipeline_mode<synchronous>, transform_indices = @transform_0, window_bounds = array<i64: 16, 16>}, {transform_indices = @transform_1, window_bounds = array<i64: 1, 16, 128>}, {pipeline_mode = #tpu.pipeline_mode<synchronous>, transform_indices = @transform_2, window_bounds = array<i64: 128, 128>}, {pipeline_mode = #tpu.pipeline_mode<synchronous>, transform_indices = @transform_3, window_bounds = array<i64: 1, 128>}, {transform_indices = @transform_4, window_bounds = array<i64: 16, 128>}]} {
    %c0 = arith.constant 0 : index
    %c0_0 = arith.constant 0 : index
    %c0_1 = arith.constant 0 : index
    %0 = vector.load %arg2[%c0, %c0_0, %c0_1] : memref<1x16x128xf32, #tpu.memory_space<vmem>>, vector<1x16x128xf32>
    %1 = vector.shape_cast %0 : vector<1x16x128xf32> to vector<16x128xf32>
    %c0_2 = arith.constant 0 : index
    %c0_3 = arith.constant 0 : index
    %2 = vector.load %arg3[%c0_2, %c0_3] : memref<128x128xf32, #tpu.memory_space<vmem>>, vector<128x128xf32>
    %cst = arith.constant dense<0.000000e+00> : vector<16x128xf32>
    %3 = tpu.matmul %1, %2, %cst {dimension_numbers = #tpu.dot_dimension_numbers<[1], [0], [0], [1], [0, 0, 1, 1], [], []>} : vector<16x128xf32>, vector<128x128xf32>, vector<16x128xf32> -> vector<16x128xf32>
    %c0_4 = arith.constant 0 : index
    %c0_5 = arith.constant 0 : index
    %4 = vector.load %arg6[%c0_4, %c0_5] : memref<16x128xf32, #tpu.memory_space<vmem>>, vector<16x128xf32>
    tpu.vector_store %arg6[%c0_4, %c0_5], %3 {strides = array<i32>} : memref<16x128xf32, #tpu.memory_space<vmem>>, vector<16x128xf32>,
    %c0_6 = arith.constant 0 : index
    %c0_7 = arith.constant 0 : index
    %5 = vector.load %arg1[%c0_6, %c0_7] : memref<16x16xf32, #tpu.memory_space<vmem>>, vector<16x16xf32>
    %c0_8 = arith.constant 0 : index
    %c0_9 = arith.constant 0 : index
    %6 = vector.load %arg6[%c0_8, %c0_9] : memref<16x128xf32, #tpu.memory_space<vmem>>, vector<16x128xf32>
    %cst_10 = arith.constant dense<0.000000e+00> : vector<16x128xf32>
    %7 = tpu.matmul %5, %6, %cst_10 {dimension_numbers = #tpu.dot_dimension_numbers<[1], [0], [0], [1], [0, 0, 1, 1], [], []>} : vector<16x16xf32>, vector<16x128xf32>, vector<16x128xf32> -> vector<16x128xf32>
    %c0_11 = arith.constant 0 : index
    %c0_12 = arith.constant 0 : index
    %8 = vector.load %arg4[%c0_11, %c0_12] : memref<1x128xf32, #tpu.memory_space<vmem>>, vector<1x128xf32>
    %9 = vector.broadcast %8 : vector<1x128xf32> to vector<16x128xf32>
    %10 = arith.addf %7, %9 : vector<16x128xf32>
    %cst_13 = arith.constant 0.000000e+00 : f32
    %11 = vector.broadcast %cst_13 : f32 to vector<16x128xf32>
    %12 = arith.maximumf %10, %11 : vector<16x128xf32>
    %c0_14 = arith.constant 0 : index
    %c0_15 = arith.constant 0 : index
    %13 = vector.load %arg5[%c0_14, %c0_15] : memref<16x128xf32, #tpu.memory_space<vmem>>, vector<16x128xf32>
    tpu.vector_store %arg5[%c0_14, %c0_15], %12 {strides = array<i32>} : memref<16x128xf32, #tpu.memory_space<vmem>>, vector<16x128xf32>,
    return
  }
  func.func @transform_0(%arg0: i32) -> (i32, i32) {
    %c0_i32 = arith.constant 0 : i32
    %c0_i32_0 = arith.constant 0 : i32
    %c0_i32_1 = arith.constant 0 : i32
    return %c0_i32, %c0_i32_0 : i32, i32
  }
  func.func @transform_1(%arg0: i32) -> (i32, i32, i32) {
    %c0_i32 = arith.constant 0 : i32
    %c0_i32_0 = arith.constant 0 : i32
    %c0_i32_1 = arith.constant 0 : i32
    return %arg0, %c0_i32, %c0_i32_0 : i32, i32, i32
  }
  func.func @transform_2(%arg0: i32) -> (i32, i32) {
    %c0_i32 = arith.constant 0 : i32
    %c0_i32_0 = arith.constant 0 : i32
    %c0_i32_1 = arith.constant 0 : i32
    return %c0_i32, %c0_i32_0 : i32, i32
  }
  func.func @transform_3(%arg0: i32) -> (i32, i32) {
    %c0_i32 = arith.constant 0 : i32
    %c0_i32_0 = arith.constant 0 : i32
    %c0_i32_1 = arith.constant 0 : i32
    return %c0_i32, %c0_i32_0 : i32, i32
  }
  func.func @transform_4(%arg0: i32) -> (i32, i32) {
    %c0_i32 = arith.constant 0 : i32
    %c0_i32_0 = arith.constant 0 : i32
    return %c0_i32, %arg0 : i32, i32
  }
}

</mosaic_0001>

<bundles_post_ra>
// kernel: tpu_custom_call.1
= control target key start
LH: loop header
LB: loop body
LE: loop exit
PB: predicated region body
PF: predicated region fallthrough
CT: control target
= control target key end

     0   :  { %9 = vsyncpa [#allocation4], 0  ;;  %s1185_s0 = inlined_call_operand.hbm [shape: f32[16,16], index: 0, kind: input, shape index: {}]   ;;  %s1186_s1 = inlined_call_operand.hbm [shape: f32[2,16,128], index: 1, kind: input, shape index: {}]   ;;  %s1187_s2 = inlined_call_operand.hbm [shape: f32[128,128], index: 2, kind: input, shape index: {}]   ;;  %s1188_s3 = inlined_call_operand.vmem [shape: f32[1,128], index: 3, kind: input, shape index: {}]   ;;  %s1189_s4 = inlined_call_operand.hbm [shape: f32[16,256], index: 4, kind: output, shape index: {}]  }
   0x1   :  { %10 = vsyncpa [#allocation7], 0 }
   0x2   :  { %12 = vsyncpa [#allocation7 + $0x1], 0 }
   0x3   :  { %13 = vsyncpa [#allocation5], 0 }
   0x4   :  { %15 = vsyncpa [#allocation5 + $0x1], 0  ;;  %s933_s15 = smov 0   ;;  %s935_s16 = smov 0  }
   0x5   :  { %s937_s17 = smov 0   ;;  %s939_s18 = smov 0  }
   0x6 LB: > { %s954_s19 = sadd.s32 4294967295, %s897_s18   ;;  %s544_s20 = sadd.s32 4294967294, %s897_s18   ;;  %s897_s18 = sphi %s939_s18, %s1217_s18   ;;  %s893_s17 = sphi %s937_s17, %s1216_s17   ;;  %s889_s16 = sphi %s935_s16, %s1215_s16   ;;  %s885_s15 = sphi %s933_s15, %s1214_s15  }
   0x7   : > { %s958_s21 = sadd.s32 1, %s897_s18   ;;  %s49_s22 = sadd.s32 1, %s893_s17 }
   0x8   : > { %s46_s23 = ssub.s32 %s897_s18, %s958_s21  ;;  %p56_p0 = scmp.ne.s32.totalorder %s893_s17, %s889_s16 }
   0x9   : > { %p47_p1 = scmp.eq.s32.totalorder %s46_s23, 0  ;;  %p57_p2 = scmp.eq.s32.totalorder %s897_s18, 0 }
   0xa   : > { %p62_p3 = scmp.ne.s32.totalorder %s889_s16, %s885_s15  ;;  %p1191_p4 = scmp.eq.s32.totalorder %s954_s19, 0 }
   0xb   : > { %s970_s24 = scalar_select %p47_p1, %s893_s17, %s49_s22  }
   0xc   : > { %p972_p5 = por %p57_p2, %p56_p0  ;;  %p978_p6 = por %p1191_p4, %p62_p3 }
   0xd   : > { %p128_p7 = scmp.eq.s32.totalorder %s954_s19, 1  ;;  %p134_p8 = scmp.eq.s32.totalorder %s544_s20, 1 }
   0xe   : > { %s1195_s25 = scalar_select %p972_p5, 1, 0 }
   0xf   : > { %s1196_s26 = scalar_select %p978_p6, 1, 0 }
  0x10   : > { %p545_p9 = scmp.ge.s32.totalorder %s897_s18, 1  ;;  %p141_p10 = scmp.lt.s32.totalorder %s897_s18, 3 }
  0x11   : > { %p985_p11 = por %p128_p7, %p56_p0  ;;  %p989_p12 = por %p134_p8, %p62_p3 }
  0x12   : > { %p993_p13 = pnand %p545_p9, %p141_p10  ;;  %s899_s30 = smov [#allocation8]  }
  0x13   : > { %s1197_s27 = scalar_select %p985_p11, 1, 0 }
  0x14   : > { %s1198_s28 = scalar_select %p989_p12, 1, 0 }
  0x15   : > { %s1199_s29 = scalar_select %p993_p13, 1, 0 }
  0x16   : > { %p677_p1 = pneg %p993_p13  ;;  %s166_s5 = sshll.u32 %s899_s30, 4  ;;  %s167_s5 = int_to_ptr.vmem [resolvable:$true] %s166_s5 }
  0x17   : > { %s900_s7 = smov [#allocation3]   ;;  %s737_s11 = scalar_lea.hbm %s1187_s2, 2048 }
  0x18   : > { %p1002_p6 = pnand %p677_p1, %p1191_p4  ;;  %s153_s8 = sshll.u32 %s900_s7, 4  ;;  %s154_s8 = int_to_ptr.vmem [resolvable:$true] %s153_s8 }
  0x19   : > { %p738_p3 = scmp.ne.s32.totalorder %s1187_s2, %s737_s11  ;;  %p744_p10 = scmp.lt.u32.totalorder %s737_s11, %s1187_s2 }
  0x1a   : > { %p739_p7 = pneg %p1002_p6 }
  0x1c   : > { %p740_p8 = pnand %p739_p7, %p738_p3 }
  0x1e   : > { %p741_p9 = pneg %p740_p8 }
  0x20   : > { %p746_p1 = pnand %p744_p10, %p741_p9 }
  0x22   : > { %749 = shalt.err (!%p746_p1)
}
  0x23   : > { %s750_s22 = scalar_lea.vmem %s167_s5, 2048  ;;  %p758_p12 = scmp.lt.s32.totalorder %s167_s5, %s167_s5 }
  0x24   : > { %p751_p2 = scmp.ne.s32.totalorder %s167_s5, %s750_s22  ;;  %p759_p11 = scmp.lt.s32.totalorder %s750_s22, %s750_s22 }
  0x26   : > { %p753_p4 = pnand %p751_p2, %p739_p7  ;;  %p760_p13 = por %p759_p11, %p758_p12 }
  0x28   : > { %p754_p0 = pneg %p753_p4 }
  0x2a   : > { %p761_p5 = pnand %p760_p13, %p754_p0 }
  0x2c   : > { %764 = shalt.err (!%p761_p5)
}
  0x2d   : > { %s901_s23 = smov 128   ;;  %s902_s30 = smov 8  }
  0x2e   : > { %683 = dma.hbm_to_vmem [thread:$0]  (!%p1002_p6), %s1187_s2, 2048, %s167_s5, [#allocation7], %s901_s23, %s901_s23, %s902_s30  }
  0x2f   : > { %p1201_p4 = scmp.ne.s32.totalorder %s1195_s25, 0  ;;  %p1202_p2 = scmp.lt.s32.totalorder %s897_s18, 2 }
  0x30   : > { %s765_s13 = scalar_lea.hbm %s1185_s0, 256 }
  0x31   : > { %p1036_p3 = pnand %p1202_p2, %p1201_p4  ;;  %p766_p5 = scmp.ne.s32.totalorder %s1185_s0, %s765_s13 }
  0x32   : > { %p772_p13 = scmp.lt.u32.totalorder %s765_s13, %s1185_s0 }
  0x33   : > { %s1203_s10 = scalar_select %p1036_p3, 1, 0 }
  0x34   : > { %p768_p11 = pnand %p766_p5, %p739_p7 }
  0x36   : > { %p769_p12 = pneg %p768_p11 }
  0x38   : > { %p774_p0 = pnand %p772_p13, %p769_p12 }
  0x3a   : > { %777 = shalt.err (!%p774_p0)
}
  0x3b   : > { %s778_s22 = scalar_lea.vmem %s154_s8, 256  ;;  %p786_p1 = scmp.lt.s32.totalorder %s154_s8, %s154_s8 }
  0x3c   : > { %p779_p8 = scmp.ne.s32.totalorder %s154_s8, %s778_s22  ;;  %p787_p4 = scmp.lt.s32.totalorder %s778_s22, %s778_s22 }
  0x3e   : > { %p781_p9 = pnand %p779_p8, %p739_p7  ;;  %p788_p2 = por %p787_p4, %p786_p1 }
  0x40   : > { %p782_p10 = pneg %p781_p9 }
  0x42   : > { %p789_p3 = pnand %p788_p2, %p782_p10 }
  0x44   : > { %792 = shalt.err (!%p789_p3)
}
  0x45   : > { %680 = dma.hbm_to_vmem [thread:$0]  (!%p1002_p6), %s1185_s0, 256, %s154_s8, [#allocation4], %s901_s23, %s901_s23, %s902_s30  }
  0x46   : > { %s183_s11 = sand.u32 1, %s897_s18   ;;  %s185_s12 = sand.u32 1, %s893_s17  }
  0x47   : > { %s549_s13 = sshll.u32 %s185_s12, 4  ;;  %s564_s14 = sshll.u32 %s897_s18, 8 }
  0x48   : > { %s1069_s6 = scalar_lea.hbm %s1186_s1, %s564_s14  ;;  %s187_s25 = scalar_lea.vmem [#allocation6], %s549_s13 }
  0x49   : > { %s194_s22 = sshll.u32 %s187_s25, 4  ;;  %s1073_s7 = scalar_lea.sflag [#allocation7], %s183_s11  ;;  %s1071_s22 = int_to_ptr.vmem [resolvable:$true] %s194_s22 }
  0x4a   : > { %s793_s8 = scalar_lea.hbm %s1069_s6, 256  ;;  %p1204_p7 = scmp.ne.s32.totalorder %s1203_s10, 0 }
  0x4b   : > { %p794_p6 = scmp.ne.s32.totalorder %s1069_s6, %s793_s8  ;;  %s798_s14 = scalar_lea.hbm %s1186_s1, 512 }
  0x4c   : > { %p795_p3 = pneg %p1204_p7  ;;  %p799_p12 = scmp.lt.u32.totalorder %s1069_s6, %s1186_s1 }
  0x4d   : > { %p800_p13 = scmp.lt.u32.totalorder %s798_s14, %s793_s8  ;;  %p802_p8 = scmp.lt.u32.totalorder %s793_s8, %s1069_s6 }
  0x4e   : > { %p796_p5 = pnand %p795_p3, %p794_p6 }
  0x4f   : > { %p801_p0 = por %p800_p13, %p799_p12 }
  0x50   : > { %p797_p11 = pneg %p796_p5 }
  0x51   : > { %p803_p9 = por %p802_p8, %p801_p0 }
  0x53   : > { %p804_p10 = pnand %p803_p9, %p797_p11 }
  0x55   : > { %807 = shalt.err (!%p804_p10)
}
  0x56   : > { %s808_s11 = scalar_lea.vmem %s1071_s22, 256  ;;  %s903_s13 = smov [#allocation6]  }
  0x57   : > { %p809_p1 = scmp.ne.s32.totalorder %s1071_s22, %s808_s11  ;;  %s813_s25 = sshll.u32 %s903_s13, 4  ;;  %s814_s25 = int_to_ptr.vmem [resolvable:$false] %s813_s25 }
  0x58   : > { %s815_s9 = scalar_lea.vmem %s814_s25, 512  ;;  %p816_p6 = scmp.lt.s32.totalorder %s1071_s22, %s814_s25 }
  0x59   : > { %p811_p4 = pnand %p809_p1, %p795_p3  ;;  %p817_p5 = scmp.lt.s32.totalorder %s815_s9, %s808_s11 }
  0x5b   : > { %p812_p2 = pneg %p811_p4  ;;  %p818_p12 = por %p817_p5, %p816_p6 }
  0x5d   : > { %p819_p13 = pnand %p818_p12, %p812_p2 }
  0x5f   : > { %822 = shalt.err (!%p819_p13)
}
  0x60   : > { %687 = dma.hbm_to_vmem [thread:$0]  (!%p1204_p7), %s1069_s6, 256, %s1071_s22, %s1073_s7, %s901_s23, %s901_s23, %s902_s30  }
  0x61   : > { %p1205_p3 = scmp.ne.s32.totalorder %s1199_s29, 0 }
  0x62   : > { %p1206_p11 = scmp.eq.s32.totalorder (!%p1205_p3), %s954_s19, 0 }
  0x63   : > { %206 = sbr.rel (%p1205_p3) target bundleno = 602 (0x25a), region = 36 }
  0x6a   : > { %868 = dma.done.wait (%p1206_p11), [#allocation4], 256   ;;  %p1207_p0 = pmov %p1206_p11 }
  0x6b   : > { %s212_s10 = sand.u32 1, %s954_s19   ;;  %s214_s8 = sand.u32 1, %s889_s16  }
  0x6c   : > { %870 = vsyncadd (%p1207_p0), [#allocation4], 4294967040  ;;  %s1114_s12 = sshll.u32 %s214_s8, 4  ;;  %s213_s23 = scalar_lea.sflag [#allocation7], %s212_s10 }
  0x6d   : > { %s216_s30 = scalar_lea.vmem [#allocation6], %s1114_s12  ;;  %p1208_p7 = scmp.ne.s32.totalorder %s1196_s26, 0 }
  0x6f   : > { %872 = dma.done.wait (%p1208_p7), %s213_s23, 256  }
  0x70   : > { %874 = vsyncadd (%p1208_p7), %s213_s23, 4294967040  ;;  %p1209_p8 = pmov %p1207_p0 }
  0x71   : > { %p1210_p9 = pmov %p1207_p0 }
  0x72   : > { %876 = dma.done.wait (%p1209_p8), [#allocation7], 2048  }
  0x73   : > { %878 = vsyncadd (%p1210_p9), [#allocation7], 4294965248  ;;  %v247_v0 = vld [vmem:[#allocation8] sm:$0xff]  ;;  %v248_v1 = vld [vmem:[#allocation8 + $0x8] sm:$0xff]  ;;  %vm351_vm0 = vcmask 130048   ;;  %s244_s6 = scalar_lea.vmem [#allocation9], %s1114_s12 }
  0x74   : > { %v249_v2 = vld [vmem:[#allocation8 + $0x10] sm:$0xff]  ;;  %v629_v3 = vpack.c.bf16 %v248_v1, %v247_v0  ;;  %v250_v4 = vld [vmem:[#allocation8 + $0x18] sm:$0xff]  ;;  %v251_v6 = vld [vmem:[#allocation8 + $0x20] sm:$0xff]  ;;  %s450_s22 = sshll.u32 %s244_s6, 4  ;;  %s561_s7 = sshll.u32 %s954_s19, 7  ;;  %s1134_s22 = int_to_ptr.vmem [resolvable:$true] %s450_s22 }
  0x75   : > { %v633_v5 = vpack.c.bf16 %v250_v4, %v249_v2  ;;  %v252_v7 = vld [vmem:[#allocation8 + $0x28] sm:$0xff]  ;;  %v245_v9 = vld [vmem:[%s216_s30] sm:$0xff]  ;;  %v254_v11 = vld [vmem:[#allocation8 + $0x38] sm:$0xff]  ;;  %s1139_s5 = scalar_lea.hbm %s1189_s4, %s561_s7  ;;  %s1143_s11 = scalar_lea.sflag [#allocation5], %s214_s8 }
  0x76   : > { %630 = vmatprep.subr.bf16.mxu0 %v629_v3  ;;  %v637_v8 = vpack.c.bf16 %v252_v7, %v251_v6  ;;  %v253_v10 = vld [vmem:[#allocation8 + $0x30] sm:$0xff]  ;;  %619 = vmatprep.mubr.f32.mxu0 %v245_v9  ;;  %v255_v13 = vld [vmem:[#allocation8 + $0x40] sm:$0xff]  ;;  %v256_v14 = vld [vmem:[#allocation8 + $0x48] sm:$0xff]  ;;  %s823_s19 = scalar_lea.vmem %s1134_s22, 256  ;;  %p1211_p1 = scmp.ne.s32.totalorder %s1197_s27, 0 }
  0x77   : > { %632 = vmatpush3.bf16.msra.mxu0 %v629_v3  ;;  %v641_v12 = vpack.c.bf16 %v254_v11, %v253_v10  ;;  %v645_v15 = vpack.c.bf16 %v256_v14, %v255_v13  ;;  %v257_v16 = vld [vmem:[#allocation8 + $0x50] sm:$0xff]  ;;  %v258_v17 = vld [vmem:[#allocation8 + $0x58] sm:$0xff]  ;;  %v259_v19 = vld [vmem:[#allocation8 + $0x60] sm:$0xff]  ;;  %p824_p10 = scmp.ne.s32.totalorder %s1134_s22, %s823_s19  ;;  %s904_s13 = smov [#allocation9]  }
  0x78   : > { %634 = vmatprep.subr.bf16.mxu0 %v633_v5  ;;  %v649_v18 = vpack.c.bf16 %v258_v17, %v257_v16  ;;  %v260_v20 = vld [vmem:[#allocation8 + $0x68] sm:$0xff]  ;;  %v261_v22 = vld [vmem:[#allocation8 + $0x70] sm:$0xff]  ;;  %v262_v23 = vld [vmem:[#allocation8 + $0x78] sm:$0xff]  ;;  %s827_s25 = sshll.u32 %s904_s13, 4  ;;  %s828_s25 = int_to_ptr.vmem [resolvable:$false] %s827_s25 }
  0x79   : > { %v653_v21 = vpack.c.bf16 %v260_v20, %v259_v19  ;;  %v657_v24 = vpack.c.bf16 %v262_v23, %v261_v22  ;;  %v246_v25 = vld [vmem:[%s216_s30 + $0x8] sm:$0xff]  ;;  %v340_v26 = vld [vmem:[#allocation3] sm:$0xff]  ;;  %p825_p4 = pnand %p824_p10, %p1211_p1  ;;  %s829_s9 = scalar_lea.vmem %s828_s25, 512 }
  0x7a   : > { %626 = vmatprep.mubr.msk.f32.mxu1 %vm351_vm0, %v340_v26  ;;  %v341_v30 = vld [vmem:[#allocation3 + $0x8] sm:$0xff]  ;;  %v557_v31 = vld [vmem:[%s1188_s3] ss:$0 sm:$0xff]  ;;  %p830_p6 = scmp.lt.s32.totalorder %s1134_s22, %s828_s25  ;;  %p831_p5 = scmp.lt.s32.totalorder %s829_s9, %s823_s19 }
  0x7b   : > { %636 = vmatpush3.bf16.msra.mxu0 %v633_v5  ;;  %p826_p2 = pneg %p825_p4 }
  0x7c   : > { %638 = vmatprep.subr.bf16.mxu0 %v637_v8  ;;  %p832_p12 = por %p831_p5, %p830_p6 }
  0x7e   : > { %p833_p13 = pnand %p832_p12, %p826_p2 }
  0x7f   : > { %640 = vmatpush3.bf16.msra.mxu0 %v637_v8 }
  0x80   : > { %642 = vmatprep.subr.bf16.mxu0 %v641_v12 }
  0x83   : > { %644 = vmatpush3.bf16.msra.mxu0 %v641_v12 }
  0x84   : > { %646 = vmatprep.subr.bf16.mxu0 %v645_v15 }
  0x87   : > { %648 = vmatpush3.bf16.msra.mxu0 %v645_v15 }
  0x88   : > { %650 = vmatprep.subr.bf16.mxu0 %v649_v18 }
  0x8b   : > { %652 = vmatpush3.bf16.msra.mxu0 %v649_v18 }
  0x8c   : > { %654 = vmatprep.subr.bf16.mxu0 %v653_v21 }
  0x8f   : > { %656 = vmatpush3.bf16.msra.mxu0 %v653_v21 }
  0x90   : > { %658 = vmatprep.subr.bf16.mxu0 %v657_v24 }
  0x93   : > { %660 = vmatpush3.bf16.msra.mxu0 %v657_v24 }
  0x96   : > { %620 = vmatmul.mubr.f32.vlgmr.msra.gmra.mrb[0].mxu0 %v246_v25 }
 0x169   : > { %v621_v27 = vpop.f32.mrb[0].mxu0 }
 0x16a   : > { %v329_v28 = vpop.f32.mrb[1].mxu0 }
 0x16b   : > { %v661_v29 = vpack.c.bf16 %v621_v27, %v329_v28 }
 0x16d   : > { %662 = vmatprep.subr.bf16.mxu1 %v661_v29 }
 0x16e   : > { %664 = vmatpush3.bf16.msra.mxu1 %v661_v29 }
 0x171   : > { %627 = vmatmul.mubr.msk.f32.vlgmr.msra.gmra.mrb[0].mxu1 %vm351_vm0, %v341_v30 }
 0x244   : > { %v628_v32 = vpop.f32.mrb[0].mxu1 }
 0x245   : > { %v430_v33 = vadd.f32 %v628_v32, %v557_v31  ;;  %v424_v34 = vpop.f32.mrb[1].mxu1 }
 0x246   : > { %v425_v35 = vadd.f32 %v557_v31, %v424_v34 }
 0x247   : > { %v434_v36 = vmax.f32 %v430_v33, 0.0 }
 0x248   : > { %v433_v37 = vmax.f32 %v425_v35, 0.0 }
 0x249   : > { %436 = vst [vmem:[%s244_s6 + $0x8] sm:$0xff] %v434_v36 }
 0x24a   : > { %435 = vst [vmem:[%s244_s6] sm:$0xff] %v433_v37 }
 0x24b   : > { %836 = shalt.err (!%p833_p13)
}
 0x24c   : > { %s837_s10 = scalar_lea.hbm %s1139_s5, 256  ;;  %s841_s23 = scalar_lea.hbm %s1189_s4, 512 }
 0x24d   : > { %p838_p3 = scmp.ne.s32.totalorder %s1139_s5, %s837_s10  ;;  %p842_p7 = scmp.lt.u32.totalorder %s1139_s5, %s1189_s4 }
 0x24e   : > { %p843_p8 = scmp.lt.u32.totalorder %s841_s23, %s837_s10  ;;  %p845_p10 = scmp.lt.u32.totalorder %s837_s10, %s1139_s5 }
 0x24f   : > { %p839_p11 = pnand %p838_p3, %p1211_p1 }
 0x250   : > { %p844_p9 = por %p843_p8, %p842_p7 }
 0x251   : > { %p840_p0 = pneg %p839_p11 }
 0x252   : > { %p846_p4 = por %p845_p10, %p844_p9 }
 0x254   : > { %p847_p2 = pnand %p846_p4, %p840_p0 }
 0x256   : > { %850 = shalt.err (!%p847_p2)
}
 0x257   : > { %s905_s29 = smov 128   ;;  %s906_s6 = smov 256  }
 0x258   : > { %s907_s7 = smov 8  }
 0x259   : > { %675 = dma.vmem_to_hbm [thread:$0]  (%p1211_p1), %s1134_s22, 256, %s1139_s5, %s1143_s11, %s905_s29, %s906_s6, %s907_s7  }
 0x25a PF: > { %s465_s14 = sand.u32 1, %s885_s15   ;;  %p1212_p6 = scmp.ne.s32.totalorder %s1198_s28, 0 }
 0x25b   : > { %p1213_p5 = scmp.ge.s32.totalorder %s897_s18, 2  ;;  %s466_s20 = scalar_lea.sflag [#allocation5], %s465_s14 }
 0x25d   : > { %p689_p12 = pnand %p1213_p5, %p1212_p6 }
 0x25f   : > { %880 = dma.done.wait (!%p689_p12), %s466_s20, 256  }
 0x260   : > { %882 = vsyncadd (!%p689_p12), %s466_s20, 4294967040  ;;  %p18_p13 = scmp.ge.s32.totalorder %s958_s21, 4   ;;  %s1214_s15 = smov %s889_s16 }
 0x261   : > { %s1215_s16 = smov %s893_s17  ;;  %s1216_s17 = smov %s970_s24 }
 0x262   : > { %s1217_s18 = smov %s958_s21  ;;  %20 = sbr.rel (!%p18_p13) target bundleno = 6 (0x6), region = 90 }
 0x269   :  { %471 = vsyncpa [#allocation4], 1 }
 0x26a   :  { %473 = vsyncpa [#allocation4 + $0x1], 1 }
 0x26b   :  { %474 = vsyncpa [#allocation7], 1 }
 0x26c   :  { %476 = vsyncpa [#allocation7 + $0x1], 1 }
 0x26d   :  { %477 = vsyncpa [#allocation5], 1 }
 0x26e   :  { %479 = vsyncpa [#allocation5 + $0x1], 1 }

// kernel: tpu_custom_call.1
= control target key start
LH: loop header
LB: loop body
LE: loop exit
PB: predicated region body
PF: predicated region fallthrough
CT: control target
= control target key end

     0   :  { %9 = vsyncpa [#allocation4], 0  ;;  %s1185_s0 = inlined_call_operand.hbm [shape: f32[16,16], index: 0, kind: input, shape index: {}]   ;;  %s1186_s1 = inlined_call_operand.hbm [shape: f32[2,16,128], index: 1, kind: input, shape index: {}]   ;;  %s1187_s2 = inlined_call_operand.hbm [shape: f32[128,128], index: 2, kind: input, shape index: {}]   ;;  %s1188_s3 = inlined_call_operand.vmem [shape: f32[1,128], index: 3, kind: input, shape index: {}]   ;;  %s1189_s4 = inlined_call_operand.hbm [shape: f32[16,256], index: 4, kind: output, shape index: {}]  }
   0x1   :  { %10 = vsyncpa [#allocation7], 0 }
   0x2   :  { %12 = vsyncpa [#allocation7 + $0x1], 0 }
   0x3   :  { %13 = vsyncpa [#allocation5], 0 }
   0x4   :  { %15 = vsyncpa [#allocation5 + $0x1], 0  ;;  %s933_s15 = smov 0   ;;  %s935_s16 = smov 0  }
   0x5   :  { %s937_s17 = smov 0   ;;  %s939_s18 = smov 0  }
   0x6 LB: > { %s954_s19 = sadd.s32 4294967295, %s897_s18   ;;  %s544_s20 = sadd.s32 4294967294, %s897_s18   ;;  %s897_s18 = sphi %s939_s18, %s1217_s18   ;;  %s893_s17 = sphi %s937_s17, %s1216_s17   ;;  %s889_s16 = sphi %s935_s16, %s1215_s16   ;;  %s885_s15 = sphi %s933_s15, %s1214_s15  }
   0x7   : > { %s958_s21 = sadd.s32 1, %s897_s18   ;;  %s49_s22 = sadd.s32 1, %s893_s17 }
   0x8   : > { %s46_s23 = ssub.s32 %s897_s18, %s958_s21  ;;  %p56_p0 = scmp.ne.s32.totalorder %s893_s17, %s889_s16 }
   0x9   : > { %p47_p1 = scmp.eq.s32.totalorder %s46_s23, 0  ;;  %p57_p2 = scmp.eq.s32.totalorder %s897_s18, 0 }
   0xa   : > { %p62_p3 = scmp.ne.s32.totalorder %s889_s16, %s885_s15  ;;  %p1191_p4 = scmp.eq.s32.totalorder %s954_s19, 0 }
   0xb   : > { %s970_s24 = scalar_select %p47_p1, %s893_s17, %s49_s22  }
   0xc   : > { %p972_p5 = por %p57_p2, %p56_p0  ;;  %p978_p6 = por %p1191_p4, %p62_p3 }
   0xd   : > { %p128_p7 = scmp.eq.s32.totalorder %s954_s19, 1  ;;  %p134_p8 = scmp.eq.s32.totalorder %s544_s20, 1 }
   0xe   : > { %s1195_s25 = scalar_select %p972_p5, 1, 0 }
   0xf   : > { %s1196_s26 = scalar_select %p978_p6, 1, 0 }
  0x10   : > { %p545_p9 = scmp.ge.s32.totalorder %s897_s18, 1  ;;  %p141_p10 = scmp.lt.s32.totalorder %s897_s18, 3 }
  0x11   : > { %p985_p11 = por %p128_p7, %p56_p0  ;;  %p989_p12 = por %p134_p8, %p62_p3 }
  0x12   : > { %p993_p13 = pnand %p545_p9, %p141_p10  ;;  %s899_s30 = smov [#allocation8]  }
  0x13   : > { %s1197_s27 = scalar_select %p985_p11, 1, 0 }
  0x14   : > { %s1198_s28 = scalar_select %p989_p12, 1, 0 }
  0x15   : > { %s1199_s29 = scalar_select %p993_p13, 1, 0 }
  0x16   : > { %p677_p1 = pneg %p993_p13  ;;  %s166_s5 = sshll.u32 %s899_s30, 4  ;;  %s167_s5 = int_to_ptr.vmem [resolvable:$true] %s166_s5 }
  0x17   : > { %s900_s7 = smov [#allocation3]   ;;  %s737_s11 = scalar_lea.hbm %s1187_s2, 2048 }
  0x18   : > { %p1002_p6 = pnand %p677_p1, %p1191_p4  ;;  %s153_s8 = sshll.u32 %s900_s7, 4  ;;  %s154_s8 = int_to_ptr.vmem [resolvable:$true] %s153_s8 }
  0x19   : > { %p738_p3 = scmp.ne.s32.totalorder %s1187_s2, %s737_s11  ;;  %p744_p10 = scmp.lt.u32.totalorder %s737_s11, %s1187_s2 }
  0x1a   : > { %p739_p7 = pneg %p1002_p6 }
  0x1c   : > { %p740_p8 = pnand %p739_p7, %p738_p3 }
  0x1e   : > { %p741_p9 = pneg %p740_p8 }
  0x20   : > { %p746_p1 = pnand %p744_p10, %p741_p9 }
  0x22   : > { %749 = shalt.err (!%p746_p1)
}
  0x23   : > { %s750_s22 = scalar_lea.vmem %s167_s5, 2048  ;;  %p758_p12 = scmp.lt.s32.totalorder %s167_s5, %s167_s5 }
  0x24   : > { %p751_p2 = scmp.ne.s32.totalorder %s167_s5, %s750_s22  ;;  %p759_p11 = scmp.lt.s32.totalorder %s750_s22, %s750_s22 }
  0x26   : > { %p753_p4 = pnand %p751_p2, %p739_p7  ;;  %p760_p13 = por %p759_p11, %p758_p12 }
  0x28   : > { %p754_p0 = pneg %p753_p4 }
  0x2a   : > { %p761_p5 = pnand %p760_p13, %p754_p0 }
  0x2c   : > { %764 = shalt.err (!%p761_p5)
}
  0x2d   : > { %s901_s23 = smov 128   ;;  %s902_s30 = smov 8  }
  0x2e   : > { %683 = dma.hbm_to_vmem [thread:$0]  (!%p1002_p6), %s1187_s2, 2048, %s167_s5, [#allocation7], %s901_s23, %s901_s23, %s902_s30  }
  0x2f   : > { %p1201_p4 = scmp.ne.s32.totalorder %s1195_s25, 0  ;;  %p1202_p2 = scmp.lt.s32.totalorder %s897_s18, 2 }
  0x30   : > { %s765_s13 = scalar_lea.hbm %s1185_s0, 256 }
  0x31   : > { %p1036_p3 = pnand %p1202_p2, %p1201_p4  ;;  %p766_p5 = scmp.ne.s32.totalorder %s1185_s0, %s765_s13 }
  0x32   : > { %p772_p13 = scmp.lt.u32.totalorder %s765_s13, %s1185_s0 }
  0x33   : > { %s1203_s10 = scalar_select %p1036_p3, 1, 0 }
  0x34   : > { %p768_p11 = pnand %p766_p5, %p739_p7 }
  0x36   : > { %p769_p12 = pneg %p768_p11 }
  0x38   : > { %p774_p0 = pnand %p772_p13, %p769_p12 }
  0x3a   : > { %777 = shalt.err (!%p774_p0)
}
  0x3b   : > { %s778_s22 = scalar_lea.vmem %s154_s8, 256  ;;  %p786_p1 = scmp.lt.s32.totalorder %s154_s8, %s154_s8 }
  0x3c   : > { %p779_p8 = scmp.ne.s32.totalorder %s154_s8, %s778_s22  ;;  %p787_p4 = scmp.lt.s32.totalorder %s778_s22, %s778_s22 }
  0x3e   : > { %p781_p9 = pnand %p779_p8, %p739_p7  ;;  %p788_p2 = por %p787_p4, %p786_p1 }
  0x40   : > { %p782_p10 = pneg %p781_p9 }
  0x42   : > { %p789_p3 = pnand %p788_p2, %p782_p10 }
  0x44   : > { %792 = shalt.err (!%p789_p3)
}
  0x45   : > { %680 = dma.hbm_to_vmem [thread:$0]  (!%p1002_p6), %s1185_s0, 256, %s154_s8, [#allocation4], %s901_s23, %s901_s23, %s902_s30  }
  0x46   : > { %s183_s11 = sand.u32 1, %s897_s18   ;;  %s185_s12 = sand.u32 1, %s893_s17  }
  0x47   : > { %s549_s13 = sshll.u32 %s185_s12, 4  ;;  %s564_s14 = sshll.u32 %s897_s18, 8 }
  0x48   : > { %s1069_s6 = scalar_lea.hbm %s1186_s1, %s564_s14  ;;  %s187_s25 = scalar_lea.vmem [#allocation6], %s549_s13 }
  0x49   : > { %s194_s22 = sshll.u32 %s187_s25, 4  ;;  %s1073_s7 = scalar_lea.sflag [#allocation7], %s183_s11  ;;  %s1071_s22 = int_to_ptr.vmem [resolvable:$true] %s194_s22 }
  0x4a   : > { %s793_s8 = scalar_lea.hbm %s1069_s6, 256  ;;  %p1204_p7 = scmp.ne.s32.totalorder %s1203_s10, 0 }
  0x4b   : > { %p794_p6 = scmp.ne.s32.totalorder %s1069_s6, %s793_s8  ;;  %s798_s14 = scalar_lea.hbm %s1186_s1, 512 }
  0x4c   : > { %p795_p3 = pneg %p1204_p7  ;;  %p799_p12 = scmp.lt.u32.totalorder %s1069_s6, %s1186_s1 }
  0x4d   : > { %p800_p13 = scmp.lt.u32.totalorder %s798_s14, %s793_s8  ;;  %p802_p8 = scmp.lt.u32.totalorder %s793_s8, %s1069_s6 }
  0x4e   : > { %p796_p5 = pnand %p795_p3, %p794_p6 }
  0x4f   : > { %p801_p0 = por %p800_p13, %p799_p12 }
  0x50   : > { %p797_p11 = pneg %p796_p5 }
  0x51   : > { %p803_p9 = por %p802_p8, %p801_p0 }
  0x53   : > { %p804_p10 = pnand %p803_p9, %p797_p11 }
  0x55   : > { %807 = shalt.err (!%p804_p10)
}
  0x56   : > { %s808_s11 = scalar_lea.vmem %s1071_s22, 256  ;;  %s903_s13 = smov [#allocation6]  }
  0x57   : > { %p809_p1 = scmp.ne.s32.totalorder %s1071_s22, %s808_s11  ;;  %s813_s25 = sshll.u32 %s903_s13, 4  ;;  %s814_s25 = int_to_ptr.vmem [resolvable:$false] %s813_s25 }
  0x58   : > { %s815_s9 = scalar_lea.vmem %s814_s25, 512  ;;  %p816_p6 = scmp.lt.s32.totalorder %s1071_s22, %s814_s25 }
  0x59   : > { %p811_p4 = pnand %p809_p1, %p795_p3  ;;  %p817_p5 = scmp.lt.s32.totalorder %s815_s9, %s808_s11 }
  0x5b   : > { %p812_p2 = pneg %p811_p4  ;;  %p818_p12 = por %p817_p5, %p816_p6 }
  0x5d   : > { %p819_p13 = pnand %p818_p12, %p812_p2 }
  0x5f   : > { %822 = shalt.err (!%p819_p13)
}
  0x60   : > { %687 = dma.hbm_to_vmem [thread:$0]  (!%p1204_p7), %s1069_s6, 256, %s1071_s22, %s1073_s7, %s901_s23, %s901_s23, %s902_s30  }
  0x61   : > { %p1205_p3 = scmp.ne.s32.totalorder %s1199_s29, 0 }
  0x62   : > { %p1206_p11 = scmp.eq.s32.totalorder (!%p1205_p3), %s954_s19, 0 }
  0x63   : > { %206 = sbr.rel (%p1205_p3) target bundleno = 602 (0x25a), region = 36 }
  0x6a   : > { %868 = dma.done.wait (%p1206_p11), [#allocation4], 256   ;;  %p1207_p0 = pmov %p1206_p11 }
  0x6b   : > { %s212_s10 = sand.u32 1, %s954_s19   ;;  %s214_s8 = sand.u32 1, %s889_s16  }
  0x6c   : > { %870 = vsyncadd (%p1207_p0), [#allocation4], 4294967040  ;;  %s1114_s12 = sshll.u32 %s214_s8, 4  ;;  %s213_s23 = scalar_lea.sflag [#allocation7], %s212_s10 }
  0x6d   : > { %s216_s30 = scalar_lea.vmem [#allocation6], %s1114_s12  ;;  %p1208_p7 = scmp.ne.s32.totalorder %s1196_s26, 0 }
  0x6f   : > { %872 = dma.done.wait (%p1208_p7), %s213_s23, 256  }
  0x70   : > { %874 = vsyncadd (%p1208_p7), %s213_s23, 4294967040  ;;  %p1209_p8 = pmov %p1207_p0 }
  0x71   : > { %p1210_p9 = pmov %p1207_p0 }
  0x72   : > { %876 = dma.done.wait (%p1209_p8), [#allocation7], 2048  }
  0x73   : > { %878 = vsyncadd (%p1210_p9), [#allocation7], 4294965248  ;;  %v247_v0 = vld [vmem:[#allocation8] sm:$0xff]  ;;  %v248_v1 = vld [vmem:[#allocation8 + $0x8] sm:$0xff]  ;;  %vm351_vm0 = vcmask 130048   ;;  %s244_s6 = scalar_lea.vmem [#allocation9], %s1114_s12 }
  0x74   : > { %v249_v2 = vld [vmem:[#allocation8 + $0x10] sm:$0xff]  ;;  %v629_v3 = vpack.c.bf16 %v248_v1, %v247_v0  ;;  %v250_v4 = vld [vmem:[#allocation8 + $0x18] sm:$0xff]  ;;  %v251_v6 = vld [vmem:[#allocation8 + $0x20] sm:$0xff]  ;;  %s450_s22 = sshll.u32 %s244_s6, 4  ;;  %s561_s7 = sshll.u32 %s954_s19, 7  ;;  %s1134_s22 = int_to_ptr.vmem [resolvable:$true] %s450_s22 }
  0x75   : > { %v633_v5 = vpack.c.bf16 %v250_v4, %v249_v2  ;;  %v252_v7 = vld [vmem:[#allocation8 + $0x28] sm:$0xff]  ;;  %v245_v9 = vld [vmem:[%s216_s30] sm:$0xff]  ;;  %v254_v11 = vld [vmem:[#allocation8 + $0x38] sm:$0xff]  ;;  %s1139_s5 = scalar_lea.hbm %s1189_s4, %s561_s7  ;;  %s1143_s11 = scalar_lea.sflag [#allocation5], %s214_s8 }
  0x76   : > { %630 = vmatprep.subr.bf16.mxu0 %v629_v3  ;;  %v637_v8 = vpack.c.bf16 %v252_v7, %v251_v6  ;;  %v253_v10 = vld [vmem:[#allocation8 + $0x30] sm:$0xff]  ;;  %619 = vmatprep.mubr.f32.mxu0 %v245_v9  ;;  %v255_v13 = vld [vmem:[#allocation8 + $0x40] sm:$0xff]  ;;  %v256_v14 = vld [vmem:[#allocation8 + $0x48] sm:$0xff]  ;;  %s823_s19 = scalar_lea.vmem %s1134_s22, 256  ;;  %p1211_p1 = scmp.ne.s32.totalorder %s1197_s27, 0 }
  0x77   : > { %632 = vmatpush3.bf16.msra.mxu0 %v629_v3  ;;  %v641_v12 = vpack.c.bf16 %v254_v11, %v253_v10  ;;  %v645_v15 = vpack.c.bf16 %v256_v14, %v255_v13  ;;  %v257_v16 = vld [vmem:[#allocation8 + $0x50] sm:$0xff]  ;;  %v258_v17 = vld [vmem:[#allocation8 + $0x58] sm:$0xff]  ;;  %v259_v19 = vld [vmem:[#allocation8 + $0x60] sm:$0xff]  ;;  %p824_p10 = scmp.ne.s32.totalorder %s1134_s22, %s823_s19  ;;  %s904_s13 = smov [#allocation9]  }
  0x78   : > { %634 = vmatprep.subr.bf16.mxu0 %v633_v5  ;;  %v649_v18 = vpack.c.bf16 %v258_v17, %v257_v16  ;;  %v260_v20 = vld [vmem:[#allocation8 + $0x68] sm:$0xff]  ;;  %v261_v22 = vld [vmem:[#allocation8 + $0x70] sm:$0xff]  ;;  %v262_v23 = vld [vmem:[#allocation8 + $0x78] sm:$0xff]  ;;  %s827_s25 = sshll.u32 %s904_s13, 4  ;;  %s828_s25 = int_to_ptr.vmem [resolvable:$false] %s827_s25 }
  0x79   : > { %v653_v21 = vpack.c.bf16 %v260_v20, %v259_v19  ;;  %v657_v24 = vpack.c.bf16 %v262_v23, %v261_v22  ;;  %v246_v25 = vld [vmem:[%s216_s30 + $0x8] sm:$0xff]  ;;  %v340_v26 = vld [vmem:[#allocation3] sm:$0xff]  ;;  %p825_p4 = pnand %p824_p10, %p1211_p1  ;;  %s829_s9 = scalar_lea.vmem %s828_s25, 512 }
  0x7a   : > { %626 = vmatprep.mubr.msk.f32.mxu1 %vm351_vm0, %v340_v26  ;;  %v341_v30 = vld [vmem:[#allocation3 + $0x8] sm:$0xff]  ;;  %v557_v31 = vld [vmem:[%s1188_s3] ss:$0 sm:$0xff]  ;;  %p830_p6 = scmp.lt.s32.totalorder %s1134_s22, %s828_s25  ;;  %p831_p5 = scmp.lt.s32.totalorder %s829_s9, %s823_s19 }
  0x7b   : > { %636 = vmatpush3.bf16.msra.mxu0 %v633_v5  ;;  %p826_p2 = pneg %p825_p4 }
  0x7c   : > { %638 = vmatprep.subr.bf16.mxu0 %v637_v8  ;;  %p832_p12 = por %p831_p5, %p830_p6 }
  0x7e   : > { %p833_p13 = pnand %p832_p12, %p826_p2 }
  0x7f   : > { %640 = vmatpush3.bf16.msra.mxu0 %v637_v8 }
  0x80   : > { %642 = vmatprep.subr.bf16.mxu0 %v641_v12 }
  0x83   : > { %644 = vmatpush3.bf16.msra.mxu0 %v641_v12 }
  0x84   : > { %646 = vmatprep.subr.bf16.mxu0 %v645_v15 }
  0x87   : > { %648 = vmatpush3.bf16.msra.mxu0 %v645_v15 }
  0x88   : > { %650 = vmatprep.subr.bf16.mxu0 %v649_v18 }
  0x8b   : > { %652 = vmatpush3.bf16.msra.mxu0 %v649_v18 }
  0x8c   : > { %654 = vmatprep.subr.bf16.mxu0 %v653_v21 }
  0x8f   : > { %656 = vmatpush3.bf16.msra.mxu0 %v653_v21 }
  0x90   : > { %658 = vmatprep.subr.bf16.mxu0 %v657_v24 }
  0x93   : > { %660 = vmatpush3.bf16.msra.mxu0 %v657_v24 }
  0x96   : > { %620 = vmatmul.mubr.f32.vlgmr.msra.gmra.mrb[0].mxu0 %v246_v25 }
 0x169   : > { %v621_v27 = vpop.f32.mrb[0].mxu0 }
 0x16a   : > { %v329_v28 = vpop.f32.mrb[1].mxu0 }
 0x16b   : > { %v661_v29 = vpack.c.bf16 %v621_v27, %v329_v28 }
 0x16d   : > { %662 = vmatprep.subr.bf16.mxu1 %v661_v29 }
 0x16e   : > { %664 = vmatpush3.bf16.msra.mxu1 %v661_v29 }
 0x171   : > { %627 = vmatmul.mubr.msk.f32.vlgmr.msra.gmra.mrb[0].mxu1 %vm351_vm0, %v341_v30 }
 0x244   : > { %v628_v32 = vpop.f32.mrb[0].mxu1 }
 0x245   : > { %v430_v33 = vadd.f32 %v628_v32, %v557_v31  ;;  %v424_v34 = vpop.f32.mrb[1].mxu1 }
 0x246   : > { %v425_v35 = vadd.f32 %v557_v31, %v424_v34 }
 0x247   : > { %v434_v36 = vmax.f32 %v430_v33, 0.0 }
 0x248   : > { %v433_v37 = vmax.f32 %v425_v35, 0.0 }
 0x249   : > { %436 = vst [vmem:[%s244_s6 + $0x8] sm:$0xff] %v434_v36 }
 0x24a   : > { %435 = vst [vmem:[%s244_s6] sm:$0xff] %v433_v37 }
 0x24b   : > { %836 = shalt.err (!%p833_p13)
}
 0x24c   : > { %s837_s10 = scalar_lea.hbm %s1139_s5, 256  ;;  %s841_s23 = scalar_lea.hbm %s1189_s4, 512 }
 0x24d   : > { %p838_p3 = scmp.ne.s32.totalorder %s1139_s5, %s837_s10  ;;  %p842_p7 = scmp.lt.u32.totalorder %s1139_s5, %s1189_s4 }
 0x24e   : > { %p843_p8 = scmp.lt.u32.totalorder %s841_s23, %s837_s10  ;;  %p845_p10 = scmp.lt.u32.totalorder %s837_s10, %s1139_s5 }
 0x24f   : > { %p839_p11 = pnand %p838_p3, %p1211_p1 }
 0x250   : > { %p844_p9 = por %p843_p8, %p842_p7 }
 0x251   : > { %p840_p0 = pneg %p839_p11 }
 0x252   : > { %p846_p4 = por %p845_p10, %p844_p9 }
 0x254   : > { %p847_p2 = pnand %p846_p4, %p840_p0 }
 0x256   : > { %850 = shalt.err (!%p847_p2)
}
 0x257   : > { %s905_s29 = smov 128   ;;  %s906_s6 = smov 256  }
 0x258   : > { %s907_s7 = smov 8  }
 0x259   : > { %675 = dma.vmem_to_hbm [thread:$0]  (%p1211_p1), %s1134_s22, 256, %s1139_s5, %s1143_s11, %s905_s29, %s906_s6, %s907_s7  }
 0x25a PF: > { %s465_s14 = sand.u32 1, %s885_s15   ;;  %p1212_p6 = scmp.ne.s32.totalorder %s1198_s28, 0 }
 0x25b   : > { %p1213_p5 = scmp.ge.s32.totalorder %s897_s18, 2  ;;  %s466_s20 = scalar_lea.sflag [#allocation5], %s465_s14 }
 0x25d   : > { %p689_p12 = pnand %p1213_p5, %p1212_p6 }
 0x25f   : > { %880 = dma.done.wait (!%p689_p12), %s466_s20, 256  }
 0x260   : > { %882 = vsyncadd (!%p689_p12), %s466_s20, 4294967040  ;;  %p18_p13 = scmp.ge.s32.totalorder %s958_s21, 4   ;;  %s1214_s15 = smov %s889_s16 }
 0x261   : > { %s1215_s16 = smov %s893_s17  ;;  %s1216_s17 = smov %s970_s24 }
 0x262   : > { %s1217_s18 = smov %s958_s21  ;;  %20 = sbr.rel (!%p18_p13) target bundleno = 6 (0x6), region = 90 }
 0x269   :  { %471 = vsyncpa [#allocation4], 1 }
 0x26a   :  { %473 = vsyncpa [#allocation4 + $0x1], 1 }
 0x26b   :  { %474 = vsyncpa [#allocation7], 1 }
 0x26c   :  { %476 = vsyncpa [#allocation7 + $0x1], 1 }
 0x26d   :  { %477 = vsyncpa [#allocation5], 1 }
 0x26e   :  { %479 = vsyncpa [#allocation5 + $0x1], 1 }

</bundles_post_ra>
